<compile_context>
chip_gen: v7x
topology: tpu7x:2x2x1
jax: 0.10.0
libtpu: 0.0.40
codegen_flags: <defaults>
</compile_context>

<pallas_src>
import functools
import math

import jax
import jax.numpy as jnp
from jax import lax
from jax.experimental import pallas as pl
from jax.experimental.pallas import tpu as pltpu


def _round_up(x, m):
    return ((x + m - 1) // m) * m


def _sublane_multiple(dtype):
    return {4: 8, 2: 16, 1: 32}.get(jnp.dtype(dtype).itemsize, 8)


def _vmem_capacity_bytes():
    try:
        return int(pltpu.get_tpu_info().vmem_capacity_bytes)
    except Exception:
        return 64 * 1024 * 1024  # conservative fallback: v7x per-TC physical VMEM


def _pick_tk(K, max_tk):
    """Largest contraction tile that divides d_model exactly (so the K axis
    never needs masking/padding) and is lane-dense; falls back to untiled K."""
    if K <= max_tk:
        return K
    for cand in (2048, 1024, 512, 256, 128):
        if cand <= max_tk and K % cand == 0:
            return cand
    return K


def _decoder_linear_kernel(x_ref, w_ref, b_ref, o_ref, acc_ref):
    # x_ref: [TM, TK]   w_ref: [TN, TK]   b_ref: [1, TN]
    # o_ref: [TM, TN]   acc_ref: [TM, TN] f32 scratch, resident across the K axis.
    k = pl.program_id(2)

    @pl.when(k == 0)
    def _():
        acc_ref[...] = jnp.zeros_like(acc_ref)

    # Contract the shared d_model axis; W stays [c_out, d_model] (both operands
    # contract their last dim -> MXU-friendly, no per-tile transpose).
    acc_ref[...] += lax.dot_general(
        x_ref[...],
        w_ref[...],
        dimension_numbers=(((1,), (1,)), ((), ())),
        preferred_element_type=jnp.float32,
    )

    @pl.when(k == pl.num_programs(2) - 1)
    def _():
        o_ref[...] = (acc_ref[...] + b_ref[...].astype(jnp.float32)).astype(o_ref.dtype)


@functools.partial(jax.jit, static_argnames=("tm", "tn", "tk"))
def decoder_forward(x, weight, bias, *, tm=None, tn=None, tk=None):
    """Equivalent of Decoder.forward: out = x @ weight.T + bias.

    x:      [..., d_model]
    weight: [c_out, d_model]   (PyTorch nn.Linear convention, not pre-transposed)
    bias:   [c_out]
    returns [..., c_out]
    """
    *lead, d_model = x.shape
    c_out = weight.shape[0]
    M = math.prod(lead) if lead else 1
    dtype = x.dtype
    itemsize = jnp.dtype(dtype).itemsize
    sub = _sublane_multiple(dtype)

    # ---- hardware budget ----------------------------------------------------
    vmem_cap = _vmem_capacity_bytes()
    budget = int(vmem_cap * 0.75)          # leave headroom for Mosaic scratch
    big_vmem = vmem_cap >= (96 << 20)      # v5e / v6e (128 MiB) vs v7x (64 MiB)

    # ---- minimal padding: only sub-minimum dims (cheap); the rest edge-masked
    x2d = x.reshape(M, d_model)
    m_eff = M
    if M < sub:
        x2d = jnp.pad(x2d, ((0, sub - M), (0, 0)))
        m_eff = sub

    w = weight.astype(dtype)
    b = bias.astype(dtype)
    c_eff = c_out
    if c_out < 128:
        w = jnp.pad(w, ((0, 128 - c_out), (0, 0)))
        b = jnp.pad(b, ((0, 128 - c_out),))
        c_eff = 128
    b2d = b.reshape(1, c_eff)

    # ---- tile planning -------------------------------------------------------
    if tk is None:
        tk = _pick_tk(d_model, 2048 if big_vmem else 1024)
    if tm is None:
        tm = 1024 if big_vmem else 512
    if tn is None:
        tn = 512
    tm = max(sub, min(tm, _round_up(m_eff, sub)))
    tn = max(128, min(tn, _round_up(c_eff, 128)))

    def vmem_bytes(tm_, tn_, tk_):
        ins = 2 * (tm_ * tk_ + tn_ * tk_ + tn_) * itemsize   # double-buffered inputs
        outs = 2 * tm_ * tn_ * itemsize                       # double-buffered output
        acc = tm_ * tn_ * 4                                   # f32 accumulator scratch
        return ins + outs + acc

    # Shrink until the working set fits the budget (respecting layout minimums).
    while vmem_bytes(tm, tn, tk) > budget and (tm > sub or tn > 128):
        if tm >= tn and tm > sub:
            tm = max(sub, tm // 2)
        elif tn > 128:
            tn = max(128, tn // 2)
        else:
            break

    # Grow the row tile while budget allows: fewer row tiles => fewer full
    # passes over the weight, the dominant HBM stream when c_out is large.
    max_tm = min(2048, _round_up(m_eff, sub))
    while tm < max_tm and vmem_bytes(min(2 * tm, max_tm), tn, tk) <= budget:
        tm = min(2 * tm, max_tm)

    grid = (pl.cdiv(m_eff, tm), pl.cdiv(c_eff, tn), pl.cdiv(d_model, tk))
    n_m, n_n, n_k = grid

    # Advisory cost: x is re-streamed once per output-column tile, W once per
    # row tile; output and bias move once.
    cost = pl.CostEstimate(
        flops=2 * M * d_model * c_out,
        transcendentals=0,
        bytes_accessed=(n_n * M * d_model + n_m * c_out * d_model
                        + M * c_out + c_out) * itemsize,
    )

    est = vmem_bytes(tm, tn, tk)
    vmem_limit = int(min(max(est + (4 << 20), 32 << 20), int(vmem_cap * 0.85)))

    out2d = pl.pallas_call(
        _decoder_linear_kernel,
        out_shape=jax.ShapeDtypeStruct((m_eff, c_eff), dtype),
        grid=grid,
        in_specs=[
            pl.BlockSpec((tm, tk), lambda i, j, k: (i, k)),   # x: row tile x K slab
            pl.BlockSpec((tn, tk), lambda i, j, k: (j, k)),   # W: out-feature tile x K slab
            pl.BlockSpec((1, tn), lambda i, j, k: (0, j)),    # bias follows N
        ],
        out_specs=pl.BlockSpec((tm, tn), lambda i, j, k: (i, j)),
        scratch_shapes=[pltpu.VMEM((tm, tn), jnp.float32)],
        compiler_params=pltpu.CompilerParams(
            dimension_semantics=("parallel", "parallel", "arbitrary"),
            vmem_limit_bytes=vmem_limit,
        ),
        cost_estimate=cost,
    )(x2d, w, b2d)

    if m_eff != M or c_eff != c_out:
        out2d = out2d[:M, :c_out]
    return out2d.reshape(*lead, c_out)


if __name__ == "__main__":
    # Small shapes consistent with the module's forward.
    B, L, d_model, c_out = 2, 8, 32, 16

    key = jax.random.PRNGKey(0)
    kx, kw, kb = jax.random.split(key, 3)

    x = jax.random.normal(kx, (B, L, d_model), dtype=jnp.float32)
    # Deterministic parameters in nn.Linear layout: weight [c_out, d_model], bias [c_out].
    weight = jax.random.normal(kw, (c_out, d_model), dtype=jnp.float32) * 0.02
    bias = jax.random.normal(kb, (c_out,), dtype=jnp.float32) * 0.02

    out = decoder_forward(x, weight, bias)
    out = jax.block_until_ready(out)

    # Sanity check against plain-JAX reference (x @ W^T + b).
    ref = jnp.einsum("bld,od->blo", x, weight) + bias
    assert out.shape == (B, L, c_out)
    assert jnp.allclose(out, ref, atol=1e-5, rtol=1e-5)

    print("KERNEL_OK")
</pallas_src>

<mosaic_0001>
module attributes {stable_mosaic.version = 11 : i64} {
  func.func @_decoder_linear_kernel(%arg0: i32, %arg1: i32, %arg2: i32, %arg3: memref<16x32xf32, #tpu.memory_space<vmem>>, %arg4: memref<128x32xf32, #tpu.memory_space<vmem>>, %arg5: memref<1x128xf32, #tpu.memory_space<vmem>>, %arg6: memref<16x128xf32, #tpu.memory_space<vmem>>, %arg7: memref<16x128xf32, #tpu.memory_space<vmem>>) attributes {dimension_semantics = [#tpu.dimension_semantics<parallel>, #tpu.dimension_semantics<parallel>, #tpu.dimension_semantics<arbitrary>], iteration_bounds = array<i64: 1, 1, 1>, scalar_prefetch = 0 : i64, scratch_operands = 1 : i64, tpu.core_type = #tpu.core_type<tc>, window_params = [{transform_indices = @transform_0, window_bounds = array<i64: 16, 32>}, {transform_indices = @transform_1, window_bounds = array<i64: 128, 32>}, {transform_indices = @transform_2, window_bounds = array<i64: 1, 128>}, {transform_indices = @transform_3, window_bounds = array<i64: 16, 128>}]} {
    %c0_i32 = arith.constant 0 : i32
    %0 = arith.cmpi eq, %arg2, %c0_i32 : i32
    %1 = arith.extui %0 : i1 to i32
    %c0_i32_0 = arith.constant 0 : i32
    %2 = arith.cmpi ne, %1, %c0_i32_0 : i32
    scf.if %2 {
      %cst_10 = arith.constant 0.000000e+00 : f32
      %12 = vector.broadcast %cst_10 : f32 to vector<16x128xf32>
      %c0_11 = arith.constant 0 : index
      %c0_12 = arith.constant 0 : index
      %13 = vector.load %arg7[%c0_11, %c0_12] : memref<16x128xf32, #tpu.memory_space<vmem>>, vector<16x128xf32>
      tpu.vector_store %arg7[%c0_11, %c0_12], %12 {strides = array<i32>} : memref<16x128xf32, #tpu.memory_space<vmem>>, vector<16x128xf32>,
    } else {
    }
    %c0 = arith.constant 0 : index
    %c0_1 = arith.constant 0 : index
    %3 = vector.load %arg7[%c0, %c0_1] : memref<16x128xf32, #tpu.memory_space<vmem>>, vector<16x128xf32>
    %c0_2 = arith.constant 0 : index
    %c0_3 = arith.constant 0 : index
    %4 = vector.load %arg3[%c0_2, %c0_3] : memref<16x32xf32, #tpu.memory_space<vmem>>, vector<16x32xf32>
    %c0_4 = arith.constant 0 : index
    %c0_5 = arith.constant 0 : index
    %5 = vector.load %arg4[%c0_4, %c0_5] : memref<128x32xf32, #tpu.memory_space<vmem>>, vector<128x32xf32>
    %cst = arith.constant dense<0.000000e+00> : vector<16x128xf32>
    %6 = tpu.matmul %4, %5, %cst {dimension_numbers = #tpu.dot_dimension_numbers<[1], [1], [0], [0], [0, 0, 1, 0], [], []>} : vector<16x32xf32>, vector<128x32xf32>, vector<16x128xf32> -> vector<16x128xf32>
    %7 = arith.addf %3, %6 : vector<16x128xf32>
    %c0_6 = arith.constant 0 : index
    %c0_7 = arith.constant 0 : index
    %8 = vector.load %arg7[%c0_6, %c0_7] : memref<16x128xf32, #tpu.memory_space<vmem>>, vector<16x128xf32>
    tpu.vector_store %arg7[%c0_6, %c0_7], %7 {strides = array<i32>} : memref<16x128xf32, #tpu.memory_space<vmem>>, vector<16x128xf32>,
    %c0_i32_8 = arith.constant 0 : i32
    %9 = arith.cmpi eq, %arg2, %c0_i32_8 : i32
    %10 = arith.extui %9 : i1 to i32
    %c0_i32_9 = arith.constant 0 : i32
    %11 = arith.cmpi ne, %10, %c0_i32_9 : i32
    scf.if %11 {
      %c0_10 = arith.constant 0 : index
      %c0_11 = arith.constant 0 : index
      %12 = vector.load %arg7[%c0_10, %c0_11] : memref<16x128xf32, #tpu.memory_space<vmem>>, vector<16x128xf32>
      %c0_12 = arith.constant 0 : index
      %c0_13 = arith.constant 0 : index
      %13 = vector.load %arg5[%c0_12, %c0_13] : memref<1x128xf32, #tpu.memory_space<vmem>>, vector<1x128xf32>
      %14 = vector.broadcast %13 : vector<1x128xf32> to vector<16x128xf32>
      %15 = arith.addf %12, %14 : vector<16x128xf32>
      %c0_14 = arith.constant 0 : index
      %c0_15 = arith.constant 0 : index
      %16 = vector.load %arg6[%c0_14, %c0_15] : memref<16x128xf32, #tpu.memory_space<vmem>>, vector<16x128xf32>
      tpu.vector_store %arg6[%c0_14, %c0_15], %15 {strides = array<i32>} : memref<16x128xf32, #tpu.memory_space<vmem>>, vector<16x128xf32>,
    } else {
    }
    return
  }
  func.func @transform_0(%arg0: i32, %arg1: i32, %arg2: i32) -> (i32, i32) {
    %c0_i32 = arith.constant 0 : i32
    return %arg0, %arg2 : i32, i32
  }
  func.func @transform_1(%arg0: i32, %arg1: i32, %arg2: i32) -> (i32, i32) {
    %c0_i32 = arith.constant 0 : i32
    return %arg1, %arg2 : i32, i32
  }
  func.func @transform_2(%arg0: i32, %arg1: i32, %arg2: i32) -> (i32, i32) {
    %c0_i32 = arith.constant 0 : i32
    %c0_i32_0 = arith.constant 0 : i32
    return %c0_i32, %arg1 : i32, i32
  }
  func.func @transform_3(%arg0: i32, %arg1: i32, %arg2: i32) -> (i32, i32) {
    %c0_i32 = arith.constant 0 : i32
    return %arg0, %arg1 : i32, i32
  }
}

</mosaic_0001>

<bundles_post_ra>
// kernel: decoder_forward.1
= control target key start
LH: loop header
LB: loop body
LE: loop exit
PB: predicated region body
PF: predicated region fallthrough
CT: control target
= control target key end

     0   :  { %vm40_vm0 = vcmask 261120   ;;  %s437_s1 = inlined_call_operand.vmem [shape: f32[128,32], index: 1, kind: input, shape index: {}]   ;;  %s438_s0 = inlined_call_operand.vmem [shape: f32[16,32], index: 0, kind: input, shape index: {}]   ;;  %s439_s2 = inlined_call_operand.vmem [shape: f32[1,128], index: 2, kind: input, shape index: {}]   ;;  %s440_s3 = inlined_call_operand.vmem [shape: f32[16,128], index: 3, kind: output, shape index: {}]  }
   0x1   :  { %v24_v0 = vld [vmem:[%s437_s1] sm:$0xff]  ;;  %v25_v1 = vld [vmem:[%s437_s1 + $0x8] sm:$0xff]  ;;  %vm342_vm1 = vmpackc.low %vm40_vm0, %vm40_vm0 }
   0x2   :  { %v266_v3 = vpack.c.bf16 %v25_v1, %v24_v0  ;;  %v26_v4 = vld [vmem:[%s437_s1 + $0x10] sm:$0xff]  ;;  %v27_v5 = vld [vmem:[%s437_s1 + $0x18] sm:$0xff]  ;;  %v22_v7 = vld [vmem:[%s438_s0] sm:$0xff] }
   0x3   :  { %v272_v6 = vpack.c.bf16 %v27_v5, %v26_v4  ;;  %v28_v8 = vld [vmem:[%s437_s1 + $0x20] sm:$0xff]  ;;  %v29_v9 = vld [vmem:[%s437_s1 + $0x28] sm:$0xff]  ;;  %263 = vmatprep.mubr.msk.f32.mxu0 %vm40_vm0, %v22_v7  ;;  %v30_v11 = vld [vmem:[%s437_s1 + $0x30] sm:$0xff] }
   0x4   :  { %268 = vmatprep.subr.msk.bf16.mxu0 %vm342_vm1, %v266_v3  ;;  %v278_v10 = vpack.c.bf16 %v29_v9, %v28_v8  ;;  %v31_v12 = vld [vmem:[%s437_s1 + $0x38] sm:$0xff]  ;;  %v32_v14 = vld [vmem:[%s437_s1 + $0x40] sm:$0xff]  ;;  %v33_v15 = vld [vmem:[%s437_s1 + $0x48] sm:$0xff] }
   0x5   :  { %271 = vmatpush3.bf16.xpose.msk.msra.mxu0 %vm342_vm1, %v266_v3  ;;  %v284_v13 = vpack.c.bf16 %v31_v12, %v30_v11  ;;  %v290_v16 = vpack.c.bf16 %v33_v15, %v32_v14  ;;  %v34_v17 = vld [vmem:[%s437_s1 + $0x50] sm:$0xff]  ;;  %v35_v18 = vld [vmem:[%s437_s1 + $0x58] sm:$0xff]  ;;  %v36_v20 = vld [vmem:[%s437_s1 + $0x60] sm:$0xff] }
   0x6   :  { %274 = vmatprep.subr.msk.bf16.mxu0 %vm342_vm1, %v272_v6  ;;  %v296_v19 = vpack.c.bf16 %v35_v18, %v34_v17  ;;  %v37_v21 = vld [vmem:[%s437_s1 + $0x68] sm:$0xff]  ;;  %v38_v23 = vld [vmem:[%s437_s1 + $0x70] sm:$0xff]  ;;  %v39_v24 = vld [vmem:[%s437_s1 + $0x78] sm:$0xff] }
   0x7   :  { %v302_v22 = vpack.c.bf16 %v37_v21, %v36_v20  ;;  %v308_v25 = vpack.c.bf16 %v39_v24, %v38_v23  ;;  %v23_v26 = vld [vmem:[%s438_s0 + $0x8] sm:$0xff]  ;;  %v212_v27 = vld [vmem:[%s439_s2] ss:$0 sm:$0xff] }
   0xd   :  { %277 = vmatpush3.bf16.xpose.msk.msra.mxu0 %vm342_vm1, %v272_v6 }
   0xe   :  { %280 = vmatprep.subr.msk.bf16.mxu0 %vm342_vm1, %v278_v10 }
  0x15   :  { %283 = vmatpush3.bf16.xpose.msk.msra.mxu0 %vm342_vm1, %v278_v10 }
  0x16   :  { %286 = vmatprep.subr.msk.bf16.mxu0 %vm342_vm1, %v284_v13 }
  0x1d   :  { %289 = vmatpush3.bf16.xpose.msk.msra.mxu0 %vm342_vm1, %v284_v13 }
  0x1e   :  { %292 = vmatprep.subr.msk.bf16.mxu0 %vm342_vm1, %v290_v16 }
  0x25   :  { %295 = vmatpush3.bf16.xpose.msk.msra.mxu0 %vm342_vm1, %v290_v16 }
  0x26   :  { %298 = vmatprep.subr.msk.bf16.mxu0 %vm342_vm1, %v296_v19 }
  0x2d   :  { %301 = vmatpush3.bf16.xpose.msk.msra.mxu0 %vm342_vm1, %v296_v19 }
  0x2e   :  { %304 = vmatprep.subr.msk.bf16.mxu0 %vm342_vm1, %v302_v22 }
  0x35   :  { %307 = vmatpush3.bf16.xpose.msk.msra.mxu0 %vm342_vm1, %v302_v22 }
  0x36   :  { %310 = vmatprep.subr.msk.bf16.mxu0 %vm342_vm1, %v308_v25 }
  0x3d   :  { %313 = vmatpush3.bf16.xpose.msk.msra.mxu0 %vm342_vm1, %v308_v25 }
  0x44   :  { %264 = vmatmul.mubr.msk.f32.vlgmr.msra.gmra.mrb[0].mxu0 %vm40_vm0, %v23_v26 }
 0x117   :  { %v265_v28 = vpop.f32.mrb[0].mxu0 }
 0x118   :  { %v187_v29 = vadd.f32 %v265_v28, %v212_v27  ;;  %v161_v30 = vpop.f32.mrb[1].mxu0 }
 0x119   :  { %v186_v31 = vadd.f32 %v212_v27, %v161_v30 }
 0x11a   :  { %189 = vst [vmem:[%s440_s3 + $0x8] sm:$0xff] %v187_v29 }
 0x11b   :  { %188 = vst [vmem:[%s440_s3] sm:$0xff] %v186_v31 }

</bundles_post_ra>
